<compile_context>
chip_gen: v7x
topology: tpu7x:2x2x1
jax: 0.10.0
libtpu: 0.0.40
codegen_flags: <defaults>
</compile_context>

<pallas_src>
import functools

import jax
import jax.numpy as jnp
from jax.experimental import pallas as pl
from jax.experimental.pallas import tpu as pltpu

MARGIN = 0.3


def _triplet_kernel(xr_ref, xc_ref, sqr_ref, sqc_ref, labm_ref, labn_ref, o_ref,
                    max_ap_ref, min_an_ref, *, margin, n_col_tiles):
    """Online hard mining on (||b||^2 - 2<a,b>); sqrt/hinge deferred to finalize."""
    j = pl.program_id(1)

    @pl.when(j == 0)
    def _():
        max_ap_ref[...] = jnp.full(max_ap_ref.shape, -jnp.inf, jnp.float32)
        min_an_ref[...] = jnp.full(min_an_ref.shape, jnp.inf, jnp.float32)

    # Gram tile G[i, k] = <x_i, x_k>.  Inputs are bf16 (default) or f32; MXU
    # accumulates in f32.  Contract the feature dim of both operands directly
    # (no in-kernel transpose).
    g = jax.lax.dot_general(xr_ref[...], xc_ref[...], (((1,), (1,)), ((), ())),
                            preferred_element_type=jnp.float32)        # (tm, tn)

    # ||a||^2 is a per-row additive constant: max/min commute with it, so mine
    # on ||b||^2 - 2<a,b> only and add ||a||^2 back in the finalize.
    adj = sqc_ref[...] - 2.0 * g                                       # (1,tn)+(tm,tn)

    same = labm_ref[...] == labn_ref[...]           # (tm,1) == (1,tn) -> (tm,tn)

    tile_ap = jnp.max(jnp.where(same, adj, -jnp.inf), axis=1, keepdims=True)
    tile_an = jnp.min(jnp.where(same, jnp.inf, adj), axis=1, keepdims=True)
    max_ap_ref[...] = jnp.maximum(max_ap_ref[...], tile_ap)
    min_an_ref[...] = jnp.minimum(min_an_ref[...], tile_an)

    @pl.when(j == n_col_tiles - 1)
    def _():
        sq_r = sqr_ref[...]                                            # (tm,1) f32
        d_ap = jnp.sqrt(jnp.maximum(max_ap_ref[...] + sq_r, 1e-12))    # clamp(1e-12).sqrt()
        d_an = jnp.sqrt(jnp.maximum(min_an_ref[...] + sq_r, 1e-12))
        # MarginRankingLoss(d_an, d_ap, y=1): relu(d_ap - d_an + margin)
        o_ref[...] = jnp.maximum(d_ap - d_an + margin, 0.0)


def _pick_tile(n, target, align):
    """Largest divisor of n that is <= target and a multiple of `align`;
    the full extent n (always a legal block) is the fallback."""
    if n <= target:
        return n
    t = (target // align) * align
    while t >= align:
        if n % t == 0:
            return t
        t -= align
    return n


def triplet_loss(inputs, targets, margin=MARGIN, *,
                 block_m=None, block_n=None, use_bf16_gram=True):
    """inputs: (N, D) float features; targets: (N,) int labels. Returns scalar loss."""
    n, d = inputs.shape
    x32 = inputs.astype(jnp.float32)

    # Squared norms precomputed once here in f32 (not per tile in the kernel);
    # keeping them f32 avoids the bf16 cancellation blow-up in
    # ||a||^2 + ||b||^2 - 2<a,b>.
    sq = jnp.sum(x32 * x32, axis=1, keepdims=True)                    # (n, 1) f32

    # Feature tiles streamed in bf16 by default: halves HBM traffic / VMEM for
    # the dominant candidate stream and feeds the bf16-native MXU.
    feat = x32.astype(jnp.bfloat16) if use_bf16_gram else x32
    lab = targets.astype(jnp.int32)

    # block_m is the arithmetic-intensity lever (candidate HBM traffic scales as
    # (n/block_m)*n*d bytes); block_n is the lane dim of the (1, block_n) side
    # inputs, keep it 128-aligned.
    if block_m is None:
        block_m = _pick_tile(n, 512, 8)
    if block_n is None:
        block_n = _pick_tile(n, 512, 128)
    assert n % block_m == 0 and n % block_n == 0, "batch must be divisible by tile sizes"
    grid = (n // block_m, n // block_n)

    # Explicit VMEM budget: double-buffered feature tiles + (tm,tn) intermediates,
    # clamped to [32 MiB, 64 MiB] so it is valid on v5e/v6e (128 MiB physical)
    # and on v7x (64 MiB physical / 32 MiB default scoped).
    feat_bytes = 2 if use_bf16_gram else 4
    est = 2 * (block_m + block_n) * d * feat_bytes      # double-buffered feature tiles
    est += 2 * (block_m + block_n) * 2 * 4              # labels + norms (double-buffered)
    est += 6 * block_m * block_n * 4                    # (tm,tn) f32 intermediates headroom
    est += 8 * block_m * 4                              # scratch accumulators + output
    vmem_limit = int(min(max(2 * est, 32 * 1024 * 1024), 64 * 1024 * 1024))

    per_anchor = pl.pallas_call(
        functools.partial(_triplet_kernel, margin=float(margin), n_col_tiles=grid[1]),
        out_shape=jax.ShapeDtypeStruct((n, 1), jnp.float32),
        grid_spec=pltpu.PrefetchScalarGridSpec(
            num_scalar_prefetch=0,
            grid=grid,
            in_specs=[
                pl.BlockSpec((block_m, d), lambda i, j: (i, 0)),   # anchor row tile
                pl.BlockSpec((block_n, d), lambda i, j: (j, 0)),   # candidate row tile (streamed)
                pl.BlockSpec((block_m, 1), lambda i, j: (i, 0)),   # ||a||^2 (f32)
                pl.BlockSpec((1, block_n), lambda i, j: (0, j)),   # ||b||^2 (f32)
                pl.BlockSpec((block_m, 1), lambda i, j: (i, 0)),   # anchor labels
                pl.BlockSpec((1, block_n), lambda i, j: (0, j)),   # candidate labels
            ],
            out_specs=pl.BlockSpec((block_m, 1), lambda i, j: (i, 0)),
            scratch_shapes=[pltpu.VMEM((block_m, 1), jnp.float32),   # running max over positives
                            pltpu.VMEM((block_m, 1), jnp.float32)],  # running min over negatives
        ),
        compiler_params=pltpu.CompilerParams(
            dimension_semantics=("parallel", "arbitrary"),
            vmem_limit_bytes=vmem_limit),
    )(feat, feat, sq, sq.T, lab.reshape(n, 1), lab.reshape(1, n))

    # Final O(N) mean kept in JAX so the anchor-row grid axis stays "parallel".
    # (Lane-dense (1, block_m) output layout deliberately skipped: absolute bytes
    # are only 4N and it would need a (bm,1)->(1,bm) relayout in the finalize.)
    return jnp.mean(per_anchor)


def triplet_loss_ref(inputs, targets, margin=MARGIN, *, gram_dtype=jnp.float32):
    """Pure-JAX reference replicating the PyTorch forward (optionally with a
    bf16 Gram matmul to mirror the kernel's default path)."""
    x = inputs.astype(jnp.float32)
    sq = jnp.sum(x * x, axis=1, keepdims=True)
    xg = x.astype(gram_dtype)
    g = jax.lax.dot_general(xg, xg, (((1,), (1,)), ((), ())),
                            preferred_element_type=jnp.float32)
    dist = jnp.sqrt(jnp.maximum(sq + sq.T - 2.0 * g, 1e-12))
    mask = targets[:, None] == targets[None, :]
    dist_ap = jnp.max(jnp.where(mask, dist, -jnp.inf), axis=1)
    dist_an = jnp.min(jnp.where(mask, jnp.inf, dist), axis=1)
    return jnp.mean(jnp.maximum(dist_ap - dist_an + margin, 0.0))


if __name__ == "__main__":
    key = jax.random.PRNGKey(0)
    n, d = 8, 32  # batch_size, feat_dim
    inputs = jax.random.normal(key, (n, d), dtype=jnp.float32)
    # Each label appears twice so every anchor has at least one positive & negative.
    targets = jnp.array([0, 0, 1, 1, 2, 2, 3, 3], dtype=jnp.int32)

    # Default path: bf16 Gram, f32 accumulation.
    loss = triplet_loss(inputs, targets)
    jax.block_until_ready(loss)

    # Bit-exact f32 debug path.
    loss_f32 = triplet_loss(inputs, targets, use_bf16_gram=False)
    jax.block_until_ready(loss_f32)

    ref_f32 = triplet_loss_ref(inputs, targets)
    ref_bf16 = triplet_loss_ref(inputs, targets, gram_dtype=jnp.bfloat16)

    assert jnp.allclose(loss_f32, ref_f32, rtol=1e-5, atol=1e-5), (loss_f32, ref_f32)
    assert jnp.allclose(loss, ref_bf16, rtol=1e-3, atol=1e-3), (loss, ref_bf16)
    assert jnp.allclose(loss, ref_f32, rtol=5e-2, atol=5e-2), (loss, ref_f32)

    # TODO(synk): mutual_flag=True (returning the full NxN dist matrix) is not
    # implemented; only the default forward path (scalar loss) is covered.
    print("KERNEL_OK")
</pallas_src>

<mosaic_0001>
module attributes {stable_mosaic.version = 11 : i64} {
  func.func @_triplet_kernel(%arg0: i32, %arg1: i32, %arg2: memref<8x32xbf16, #tpu.memory_space<vmem>>, %arg3: memref<8x32xbf16, #tpu.memory_space<vmem>>, %arg4: memref<8x1xf32, #tpu.memory_space<vmem>>, %arg5: memref<1x8xf32, #tpu.memory_space<vmem>>, %arg6: memref<8x1xi32, #tpu.memory_space<vmem>>, %arg7: memref<1x8xi32, #tpu.memory_space<vmem>>, %arg8: memref<8x1xf32, #tpu.memory_space<vmem>>, %arg9: memref<8x1xf32, #tpu.memory_space<vmem>>, %arg10: memref<8x1xf32, #tpu.memory_space<vmem>>) attributes {dimension_semantics = [#tpu.dimension_semantics<parallel>, #tpu.dimension_semantics<arbitrary>], iteration_bounds = array<i64: 1, 1>, scalar_prefetch = 0 : i64, scratch_operands = 2 : i64, tpu.core_type = #tpu.core_type<tc>, window_params = [{transform_indices = @transform_0, window_bounds = array<i64: 8, 32>}, {transform_indices = @transform_1, window_bounds = array<i64: 8, 32>}, {transform_indices = @transform_2, window_bounds = array<i64: 8, 1>}, {transform_indices = @transform_3, window_bounds = array<i64: 1, 8>}, {transform_indices = @transform_4, window_bounds = array<i64: 8, 1>}, {transform_indices = @transform_5, window_bounds = array<i64: 1, 8>}, {transform_indices = @transform_6, window_bounds = array<i64: 8, 1>}]} {
    %c0_i32 = arith.constant 0 : i32
    %0 = arith.cmpi eq, %arg1, %c0_i32 : i32
    %1 = arith.extui %0 : i1 to i32
    %c0_i32_0 = arith.constant 0 : i32
    %2 = arith.cmpi ne, %1, %c0_i32_0 : i32
    scf.if %2 {
      %cst_25 = arith.constant 0xFF800000 : f32
      %33 = vector.broadcast %cst_25 : f32 to vector<8x1xf32>
      %c0_26 = arith.constant 0 : index
      %c0_27 = arith.constant 0 : index
      %34 = vector.load %arg9[%c0_26, %c0_27] : memref<8x1xf32, #tpu.memory_space<vmem>>, vector<8x1xf32>
      tpu.vector_store %arg9[%c0_26, %c0_27], %33 {strides = array<i32>} : memref<8x1xf32, #tpu.memory_space<vmem>>, vector<8x1xf32>,
      %cst_28 = arith.constant 0x7F800000 : f32
      %35 = vector.broadcast %cst_28 : f32 to vector<8x1xf32>
      %c0_29 = arith.constant 0 : index
      %c0_30 = arith.constant 0 : index
      %36 = vector.load %arg10[%c0_29, %c0_30] : memref<8x1xf32, #tpu.memory_space<vmem>>, vector<8x1xf32>
      tpu.vector_store %arg10[%c0_29, %c0_30], %35 {strides = array<i32>} : memref<8x1xf32, #tpu.memory_space<vmem>>, vector<8x1xf32>,
    } else {
    }
    %c0 = arith.constant 0 : index
    %c0_1 = arith.constant 0 : index
    %3 = vector.load %arg2[%c0, %c0_1] : memref<8x32xbf16, #tpu.memory_space<vmem>>, vector<8x32xbf16>
    %c0_2 = arith.constant 0 : index
    %c0_3 = arith.constant 0 : index
    %4 = vector.load %arg3[%c0_2, %c0_3] : memref<8x32xbf16, #tpu.memory_space<vmem>>, vector<8x32xbf16>
    %cst = arith.constant dense<0.000000e+00> : vector<8x8xf32>
    %5 = tpu.matmul %3, %4, %cst {dimension_numbers = #tpu.dot_dimension_numbers<[1], [1], [0], [0], [0, 0, 1, 0], [], []>} : vector<8x32xbf16>, vector<8x32xbf16>, vector<8x8xf32> -> vector<8x8xf32>
    %c0_4 = arith.constant 0 : index
    %c0_5 = arith.constant 0 : index
    %6 = vector.load %arg5[%c0_4, %c0_5] : memref<1x8xf32, #tpu.memory_space<vmem>>, vector<1x8xf32>
    %cst_6 = arith.constant 2.000000e+00 : f32
    %7 = vector.broadcast %cst_6 : f32 to vector<8x8xf32>
    %8 = arith.mulf %7, %5 : vector<8x8xf32>
    %9 = vector.broadcast %6 : vector<1x8xf32> to vector<8x8xf32>
    %10 = arith.subf %9, %8 : vector<8x8xf32>
    %c0_7 = arith.constant 0 : index
    %c0_8 = arith.constant 0 : index
    %11 = vector.load %arg6[%c0_7, %c0_8] : memref<8x1xi32, #tpu.memory_space<vmem>>, vector<8x1xi32>
    %c0_9 = arith.constant 0 : index
    %c0_10 = arith.constant 0 : index
    %12 = vector.load %arg7[%c0_9, %c0_10] : memref<1x8xi32, #tpu.memory_space<vmem>>, vector<1x8xi32>
    %13 = vector.broadcast %11 : vector<8x1xi32> to vector<8x8xi32>
    %14 = vector.broadcast %12 : vector<1x8xi32> to vector<8x8xi32>
    %15 = arith.cmpi eq, %13, %14 : vector<8x8xi32>
    %cst_11 = arith.constant 0xFF800000 : f32
    %16 = vector.broadcast %cst_11 : f32 to vector<8x8xf32>
    %17 = arith.select %15, %10, %16 : vector<8x8xi1>, vector<8x8xf32>
    %cst_12 = arith.constant dense<0xFF800000> : vector<8xf32>
    %18 = vector.multi_reduction <maximumf>, %17, %cst_12 [1] : vector<8x8xf32> to vector<8xf32>
    %19 = vector.shape_cast %18 : vector<8xf32> to vector<8x1xf32>
    %cst_13 = arith.constant 0x7F800000 : f32
    %20 = vector.broadcast %cst_13 : f32 to vector<8x8xf32>
    %21 = arith.select %15, %20, %10 : vector<8x8xi1>, vector<8x8xf32>
    %cst_14 = arith.constant dense<0x7F800000> : vector<8xf32>
    %22 = vector.multi_reduction <minimumf>, %21, %cst_14 [1] : vector<8x8xf32> to vector<8xf32>
    %23 = vector.shape_cast %22 : vector<8xf32> to vector<8x1xf32>
    %c0_15 = arith.constant 0 : index
    %c0_16 = arith.constant 0 : index
    %24 = vector.load %arg9[%c0_15, %c0_16] : memref<8x1xf32, #tpu.memory_space<vmem>>, vector<8x1xf32>
    %25 = arith.maximumf %24, %19 : vector<8x1xf32>
    %c0_17 = arith.constant 0 : index
    %c0_18 = arith.constant 0 : index
    %26 = vector.load %arg9[%c0_17, %c0_18] : memref<8x1xf32, #tpu.memory_space<vmem>>, vector<8x1xf32>
    tpu.vector_store %arg9[%c0_17, %c0_18], %25 {strides = array<i32>} : memref<8x1xf32, #tpu.memory_space<vmem>>, vector<8x1xf32>,
    %c0_19 = arith.constant 0 : index
    %c0_20 = arith.constant 0 : index
    %27 = vector.load %arg10[%c0_19, %c0_20] : memref<8x1xf32, #tpu.memory_space<vmem>>, vector<8x1xf32>
    %28 = arith.minimumf %27, %23 : vector<8x1xf32>
    %c0_21 = arith.constant 0 : index
    %c0_22 = arith.constant 0 : index
    %29 = vector.load %arg10[%c0_21, %c0_22] : memref<8x1xf32, #tpu.memory_space<vmem>>, vector<8x1xf32>
    tpu.vector_store %arg10[%c0_21, %c0_22], %28 {strides = array<i32>} : memref<8x1xf32, #tpu.memory_space<vmem>>, vector<8x1xf32>,
    %c0_i32_23 = arith.constant 0 : i32
    %30 = arith.cmpi eq, %arg1, %c0_i32_23 : i32
    %31 = arith.extui %30 : i1 to i32
    %c0_i32_24 = arith.constant 0 : i32
    %32 = arith.cmpi ne, %31, %c0_i32_24 : i32
    scf.if %32 {
      %c0_25 = arith.constant 0 : index
      %c0_26 = arith.constant 0 : index
      %33 = vector.load %arg4[%c0_25, %c0_26] : memref<8x1xf32, #tpu.memory_space<vmem>>, vector<8x1xf32>
      %c0_27 = arith.constant 0 : index
      %c0_28 = arith.constant 0 : index
      %34 = vector.load %arg9[%c0_27, %c0_28] : memref<8x1xf32, #tpu.memory_space<vmem>>, vector<8x1xf32>
      %35 = arith.addf %34, %33 : vector<8x1xf32>
      %cst_29 = arith.constant 9.99999996E-13 : f32
      %36 = vector.broadcast %cst_29 : f32 to vector<8x1xf32>
      %37 = arith.maximumf %35, %36 : vector<8x1xf32>
      %38 = math.sqrt %37 : vector<8x1xf32>
      %c0_30 = arith.constant 0 : index
      %c0_31 = arith.constant 0 : index
      %39 = vector.load %arg10[%c0_30, %c0_31] : memref<8x1xf32, #tpu.memory_space<vmem>>, vector<8x1xf32>
      %40 = arith.addf %39, %33 : vector<8x1xf32>
      %cst_32 = arith.constant 9.99999996E-13 : f32
      %41 = vector.broadcast %cst_32 : f32 to vector<8x1xf32>
      %42 = arith.maximumf %40, %41 : vector<8x1xf32>
      %43 = math.sqrt %42 : vector<8x1xf32>
      %44 = arith.subf %38, %43 : vector<8x1xf32>
      %cst_33 = arith.constant 3.000000e-01 : f32
      %45 = vector.broadcast %cst_33 : f32 to vector<8x1xf32>
      %46 = arith.addf %44, %45 : vector<8x1xf32>
      %cst_34 = arith.constant 0.000000e+00 : f32
      %47 = vector.broadcast %cst_34 : f32 to vector<8x1xf32>
      %48 = arith.maximumf %46, %47 : vector<8x1xf32>
      %c0_35 = arith.constant 0 : index
      %c0_36 = arith.constant 0 : index
      %49 = vector.load %arg8[%c0_35, %c0_36] : memref<8x1xf32, #tpu.memory_space<vmem>>, vector<8x1xf32>
      tpu.vector_store %arg8[%c0_35, %c0_36], %48 {strides = array<i32>} : memref<8x1xf32, #tpu.memory_space<vmem>>, vector<8x1xf32>,
    } else {
    }
    return
  }
  func.func @transform_0(%arg0: i32, %arg1: i32) -> (i32, i32) {
    %c0_i32 = arith.constant 0 : i32
    %c0_i32_0 = arith.constant 0 : i32
    return %arg0, %c0_i32 : i32, i32
  }
  func.func @transform_1(%arg0: i32, %arg1: i32) -> (i32, i32) {
    %c0_i32 = arith.constant 0 : i32
    %c0_i32_0 = arith.constant 0 : i32
    return %arg1, %c0_i32 : i32, i32
  }
  func.func @transform_2(%arg0: i32, %arg1: i32) -> (i32, i32) {
    %c0_i32 = arith.constant 0 : i32
    %c0_i32_0 = arith.constant 0 : i32
    return %arg0, %c0_i32 : i32, i32
  }
  func.func @transform_3(%arg0: i32, %arg1: i32) -> (i32, i32) {
    %c0_i32 = arith.constant 0 : i32
    %c0_i32_0 = arith.constant 0 : i32
    return %c0_i32, %arg1 : i32, i32
  }
  func.func @transform_4(%arg0: i32, %arg1: i32) -> (i32, i32) {
    %c0_i32 = arith.constant 0 : i32
    %c0_i32_0 = arith.constant 0 : i32
    return %arg0, %c0_i32 : i32, i32
  }
  func.func @transform_5(%arg0: i32, %arg1: i32) -> (i32, i32) {
    %c0_i32 = arith.constant 0 : i32
    %c0_i32_0 = arith.constant 0 : i32
    return %c0_i32, %arg1 : i32, i32
  }
  func.func @transform_6(%arg0: i32, %arg1: i32) -> (i32, i32) {
    %c0_i32 = arith.constant 0 : i32
    %c0_i32_0 = arith.constant 0 : i32
    return %arg0, %c0_i32 : i32, i32
  }
}

</mosaic_0001>

<bundles_post_ra>
// kernel: tpu_custom_call.1
= control target key start
LH: loop header
LB: loop body
LE: loop exit
PB: predicated region body
PF: predicated region fallthrough
CT: control target
= control target key end

     0   :  { %vm33_vm0 = vcmask 261120   ;;  %v168_v0 = vmov 0.0   ;;  %vm169_vm1 = vmmov 0   ;;  %v170_v4 = vmov 0   ;;  %s234_s1 = inlined_call_operand.vmem [shape: bf16[8,32], index: 1, kind: input, shape index: {}]   ;;  %s235_s4 = inlined_call_operand.vmem [shape: s32[8,1], index: 4, kind: input, shape index: {}]   ;;  %s236_s0 = inlined_call_operand.vmem [shape: bf16[8,32], index: 0, kind: input, shape index: {}]   ;;  %s237_s5 = inlined_call_operand.vmem [shape: s32[1,8], index: 5, kind: input, shape index: {}]   ;;  %s238_s3 = inlined_call_operand.vmem [shape: f32[1,8], index: 3, kind: input, shape index: {}]   ;;  %s239_s2 = inlined_call_operand.vmem [shape: f32[8,1], index: 2, kind: input, shape index: {}]   ;;  %s240_s6 = inlined_call_operand.vmem [shape: f32[8,1], index: 6, kind: output, shape index: {}]  }
   0x1   :  { %152 = vmatprep.subr.bf16.mxu0 %v168_v0  ;;  %v32_v1 = vld [vmem:[%s234_s1] sm:$0xf]  ;;  %154 = vmatprep.mubr.msk.bf16.mxu0 %vm169_vm1, %v168_v0  ;;  %vm28_vm2 = vcmask 7168   ;;  %v171_v6 = vmov inf   ;;  %vm100_vm4 = vcmask 64512   ;;  %v172_v20 = vmov -inf  }
   0x2   :  { %v89_v2 = vld [vmem:[%s235_s4] sm:$0xff]  ;;  %v38_v3 = vsel %vm33_vm0, %v32_v1, 0  ;;  %163 = vset.pattern.permute.xlu0 %v170_v4  ;;  %30 = vst.msk [vmem:[#allocation3] sm:$0xff] %vm28_vm2, %v171_v6  ;;  %29 = vst.msk [vmem:[#allocation2] sm:$0xff] %vm28_vm2, %v172_v20 }
   0x3   :  { %153 = vmatpush3.bf16.xpose.msra.mxu0 %v38_v3  ;;  %92 = vperm.xlu0 %163, %v89_v2   ;;  %v31_v5 = vld [vmem:[%s236_s0] sm:$0xf] }
   0x4   :  { %v149_v7 = vld [vmem:[%s237_s5] ss:$0 sm:$0xff] }
   0x5   :  { %v148_v10 = vld [vmem:[%s238_s3] ss:$0 sm:$0xff] }
   0x6   :  { %v118_v27 = vld [vmem:[%s239_s2] sm:$0xff] }
   0x9   :  { %v112_v21 = vld [vmem:[#allocation3] sm:$0xff]  ;;  %v108_v22 = vld [vmem:[#allocation2] sm:$0xff] }
   0xa   :  { %155 = vmatmul.mubr.msk.bf16.vlgmr.msra.gmra.mrb[0].mxu0 %vm33_vm0, %v31_v5 }
  0x82   :  { %v93_v8 = vpop.permute.xlu0 %92 }
  0x83   :  { %vm98_vm3 = vcmp.eq.s32.totalorder %v93_v8, %v149_v7 }
  0xdd   :  { %v74_v9 = vpop.f32.mrb[0].mxu0 }
  0xde   :  { %v81_v11 = vmul.f32 2.0, %v74_v9  ;;  %v156_v12 = vpop.f32.mrb[1].mxu0 }
  0xdf   :  { %v77_v13 = vpop.f32.mrb[2].mxu0 }
  0xe0   :  { %v88_v14 = vsub.f32 %v148_v10, %v81_v11  ;;  %v157_v15 = vpop.f32.mrb[3].mxu0 }
  0xe2   :  { %v104_v16 = vsel %vm98_vm3, inf, %v88_v14  ;;  %v99_v17 = vsel %vm98_vm3, %v88_v14, -inf }
  0xe3   :  { %v105_v18 = vsel %vm100_vm4, %v104_v16, inf  ;;  %v101_v19 = vsel %vm100_vm4, %v99_v17, -inf }
  0xe4   :  { %106 = vmin.xlane.f32.xlu1 %v105_v18  ;;  %102 = vmax.xlane.f32.xlu0 %v101_v19 }
 0x171   :  { %v107_v23 = vpop.xlane.xlu1 %106  ;;  %v103_v24 = vpop.xlane.xlu0 %102 }
 0x172   :  { %v113_v25 = vmin.f32 %v112_v21, %v107_v23  ;;  %v109_v26 = vmax.f32 %v108_v22, %v103_v24 }
 0x174   :  { %114 = vst.msk [vmem:[#allocation3] sm:$0xff] %vm28_vm2, %v113_v25  ;;  %111 = vst.msk [vmem:[#allocation2] sm:$0xff] %vm28_vm2, %v109_v26 }
 0x17b   :  { %v129_v28 = vld [vmem:[#allocation3] sm:$0xff]  ;;  %v119_v29 = vld [vmem:[#allocation2] sm:$0xff] }
 0x17c   :  { %v130_v30 = vadd.f32 %v129_v28, %v118_v27  ;;  %v120_v31 = vadd.f32 %v119_v29, %v118_v27 }
 0x17e   :  { %v131_v32 = vmax.f32 %v130_v30, 1e-12  ;;  %v121_v33 = vmax.f32 %v120_v31, 1e-12 }
 0x180   :  { %164 = vrsqrt.f32 %v131_v32  ;;  %vm134_vm5 = vcmp.eq.f32.partialorder %v131_v32, inf  ;;  %v137_v37 = vand.u32 2147483648, %v131_v32  ;;  %vm136_vm6 = vcmp.eq.f32.partialorder %v131_v32, 0.0 }
 0x181   :  { %166 = vrsqrt.f32 %v121_v33  ;;  %vm124_vm7 = vcmp.eq.f32.partialorder %v121_v33, inf  ;;  %v127_v40 = vand.u32 2147483648, %v121_v33  ;;  %vm126_vm8 = vcmp.eq.f32.partialorder %v121_v33, 0.0 }
 0x18a   :  { %v165_v34 = vpop.eup %164 }
 0x18b   :  { %v167_v35 = vpop.eup %166  ;;  %v133_v36 = vmul.f32 %v165_v34, %v131_v32 }
 0x18c   :  { %v123_v38 = vmul.f32 %v167_v35, %v121_v33 }
 0x18d   :  { %v135_v39 = vsel %vm134_vm5, %v131_v32, %v133_v36 }
 0x18e   :  { %v138_v41 = vsel %vm136_vm6, %v137_v37, %v135_v39  ;;  %v125_v42 = vsel %vm124_vm7, %v121_v33, %v123_v38 }
 0x18f   :  { %v128_v43 = vsel %vm126_vm8, %v127_v40, %v125_v42 }
 0x190   :  { %v139_v44 = vsub.f32 %v128_v43, %v138_v41 }
 0x192   :  { %v140_v45 = vadd.f32 0.3, %v139_v44 }
 0x194   :  { %v141_v46 = vmax.f32 %v140_v45, 0.0 }
 0x196   :  { %142 = vst.msk [vmem:[%s240_s6] sm:$0xff] %vm28_vm2, %v141_v46 }

</bundles_post_ra>
